<compile_context>
chip_gen: v7x
topology: tpu7x:2x2x1
jax: 0.10.0
libtpu: 0.0.40
codegen_flags: <defaults>
</compile_context>

<pallas_src>
import functools

import jax
import jax.numpy as jnp
from jax.experimental import pallas as pl
from jax.experimental.pallas import tpu as pltpu

_LANE = 128


def _softplus(x):
    # Numerically stable softplus: max(x, 0) + log(1 + exp(-|x|)).  Matches torch.nn.Softplus.
    return jnp.maximum(x, 0.0) + jnp.log(1.0 + jnp.exp(-jnp.abs(x)))


def _round_up(n, m):
    return ((n + m - 1) // m) * m


def _pad_axis(a, axis, target):
    pad = target - a.shape[axis]
    if pad == 0:
        return a
    widths = [(0, 0)] * a.ndim
    widths[axis] = (0, pad)
    return jnp.pad(a, widths)


# ---------------------------------------------------------------------------
# Generation-aware tiling helpers
# ---------------------------------------------------------------------------
def _vmem_capacity_bytes():
    try:
        return int(pltpu.get_tpu_info().vmem_capacity_bytes)
    except Exception:
        return 64 << 20  # conservative fallback: v7x has 64 MiB per TensorCore


def _prefer_even_grid_steps():
    # Multi-TensorCore parts (v7x) shard "parallel" grid axes across cores -> a 1/odd-step grid
    # idles a core.  Single-TC parts (v5e/v6e) just want the largest single tile instead.
    try:
        dev = jax.devices()[0]
        n_cores = getattr(dev, "num_cores", None)
        if n_cores is not None:
            return int(n_cores) > 1
        kind = str(getattr(dev, "device_kind", "")).lower()
        return ("v7" in kind) or ("7x" in kind)
    except Exception:
        return False


def _choose_tiling(batch, n, x_dim, d_pad, itemsize):
    cap = _vmem_capacity_bytes()
    vmem_limit = min((cap * 3) // 4, 100 << 20)   # ~48 MiB on v7x, ~96 MiB on v5e/v6e
    # Rough per-set VMEM footprint of one grid step: x tile + a handful of (N, 2*d_pad) f32
    # activation / matmul temporaries live at once inside the fused body.
    per_set = n * (x_dim * itemsize + 8 * d_pad * 4)
    budget = cap // 6
    # Output block is 2-D (tb, z1_pad): its second-minor dim must be a multiple of 8 or == batch.
    cands = [d for d in range(1, batch + 1) if batch % d == 0 and (d % 8 == 0 or d == batch)]
    fitting = [d for d in cands if d * per_set <= budget] or [min(cands)]
    if _prefer_even_grid_steps():
        even = [d for d in fitting if (batch // d) % 2 == 0]
        if even:
            return max(even), vmem_limit
    return max(fitting), vmem_limit


# ---------------------------------------------------------------------------
# One-time parameter preparation (padding / [Gamma|Lambda] concatenation hoisted out of forward)
# ---------------------------------------------------------------------------
def prepare_params(params, pool="mean"):
    """params['phi'] = [(wg, bg, wl)] * 3 with weights stored (in, out) (pre-transposed vs.
    torch's nn.Linear); params['ro_w1'/'ro_b1'/'ro_w2'/'ro_b2'] for the ro MLP."""
    assert pool in ("mean", "max", "max1")
    phi = []
    for layer_idx, (wg, bg, wl) in enumerate(params["phi"]):
        in_dim, out_dim = wg.shape
        outp = _round_up(out_dim, _LANE)
        # Layer 0 consumes raw (unpadded) x; later layers consume the lane-padded activation,
        # so their padded weight ROWS must be zero (this is the padding-correctness invariant).
        inp = in_dim if layer_idx == 0 else _round_up(in_dim, _LANE)
        lam_w = wg if pool == "max1" else wl   # PermEqui1_max has no Lambda: reuse Gamma weight
        wg_p = _pad_axis(_pad_axis(wg, 0, inp), 1, outp)
        wl_p = _pad_axis(_pad_axis(lam_w, 0, inp), 1, outp)
        wcat = jnp.concatenate([wg_p, wl_p], axis=1)            # (inp, 2*outp) = [Gamma|Lambda]
        bg_p = _pad_axis(bg.reshape(1, -1), 1, outp)
        phi.append((wcat, bg_p))

    d_dim = params["ro_w1"].shape[0]
    z1 = params["ro_w2"].shape[1]
    dp = _round_up(d_dim, _LANE)
    zp = _round_up(z1, _LANE)
    return {
        "pool": pool,
        "z1_dim": z1,
        "phi": phi,
        "ro_w1": _pad_axis(_pad_axis(params["ro_w1"], 0, dp), 1, dp),
        "ro_b1": _pad_axis(params["ro_b1"].reshape(1, -1), 1, dp),
        "ro_w2": _pad_axis(_pad_axis(params["ro_w2"], 0, dp), 1, zp),
        "ro_b2": _pad_axis(params["ro_b2"].reshape(1, -1), 1, zp),
    }


# ---------------------------------------------------------------------------
# Fused G_inv kernel: 3 x (PermEqui2 + Softplus) -> max over set -> Linear -> Softplus -> Linear
# ---------------------------------------------------------------------------
def _g_inv_kernel(x_ref, wc1_ref, b1_ref, wc2_ref, b2_ref, wc3_ref, b3_ref,
                  rw1_ref, rb1_ref, rw2_ref, rb2_ref, o_ref, *, pool):
    def perm_equi(h3, w_ref, b_ref):
        # h3: (tb, n, k) f32 value.  w_ref: (k, 2*d) = [Gamma | Lambda].  b_ref: (1, d).
        tb, n, k = h3.shape
        d = w_ref.shape[1] // 2
        wdt = w_ref.dtype
        h2 = h3.reshape(tb * n, k)
        if pool == "mean":
            # Single 2*d-wide MXU matmul; Lambda(mean(x)) == mean(Lambda(x)) since Lambda is linear.
            gl = jnp.dot(h2.astype(wdt), w_ref[...], preferred_element_type=jnp.float32)
            gam = gl[:, :d]                                            # (tb*n, d) f32
            lam = jnp.mean(gl[:, d:].reshape(tb, n, d), axis=1)        # (tb, d)   f32
        else:  # 'max' / 'max1': max does not commute with the linear map -> pool first.
            gam = jnp.dot(h2.astype(wdt), w_ref[:, :d],
                          preferred_element_type=jnp.float32)          # (tb*n, d) f32
            pooled = jnp.max(h3, axis=1)                               # (tb, k)
            lam = jnp.dot(pooled.astype(wdt), w_ref[:, d:],
                          preferred_element_type=jnp.float32)          # (tb, d)   f32
        corr = b_ref[...].astype(jnp.float32) - lam                    # (tb, d)  bias+Lambda folded
        return _softplus(gam.reshape(tb, n, d) + corr[:, None, :])     # (tb, n, d) f32

    h = x_ref[...].astype(jnp.float32)          # (tb, n, x_dim) -- raw width, no lane padding
    h = perm_equi(h, wc1_ref, b1_ref)
    h = perm_equi(h, wc2_ref, b2_ref)
    h = perm_equi(h, wc3_ref, b3_ref)

    # ro head fused in: max over the set axis -> Linear -> Softplus -> Linear.
    s = jnp.max(h, axis=1)                                              # (tb, d)
    z = jnp.dot(s.astype(rw1_ref.dtype), rw1_ref[...],
                preferred_element_type=jnp.float32) + rb1_ref[...].astype(jnp.float32)
    z = _softplus(z)
    out = jnp.dot(z.astype(rw2_ref.dtype), rw2_ref[...],
                  preferred_element_type=jnp.float32) + rb2_ref[...].astype(jnp.float32)
    o_ref[...] = out.astype(o_ref.dtype)                                # lane-dense 2-D store


def g_inv_forward(x, prep):
    """x: (B, N, x_dim); prep = prepare_params(params, pool).  Returns (B, z1_dim)."""
    B, N, XD = x.shape
    pool = prep["pool"]
    (wc1, b1), (wc2, b2), (wc3, b3) = prep["phi"]
    rw1, rb1, rw2, rb2 = prep["ro_w1"], prep["ro_b1"], prep["ro_w2"], prep["ro_b2"]
    DP = b1.shape[1]
    ZP = rb2.shape[1]
    z1 = prep["z1_dim"]
    itemsize = jnp.dtype(x.dtype).itemsize

    tb, vmem_limit = _choose_tiling(B, N, XD, DP, itemsize)

    # Advisory cost hint (what actually runs / moves; padded MXU dims for flops, real x for bytes).
    flops = 2 * B * N * (XD * 2 * DP + 2 * (DP * 2 * DP)) + 2 * B * (DP * DP + DP * ZP)
    transcendentals = 2 * (3 * B * N * DP + B * DP)       # softplus = exp + log per element
    weight_bytes = sum(int(a.size) * jnp.dtype(a.dtype).itemsize
                       for a in (wc1, b1, wc2, b2, wc3, b3, rw1, rb1, rw2, rb2))
    bytes_accessed = itemsize * (B * N * XD + B * ZP) + weight_bytes

    kernel = functools.partial(_g_inv_kernel, pool=pool)
    out_p = pl.pallas_call(
        kernel,
        out_shape=jax.ShapeDtypeStruct((B, ZP), x.dtype),
        grid_spec=pltpu.PrefetchScalarGridSpec(
            num_scalar_prefetch=0,
            grid=(B // tb,),
            in_specs=[
                pl.BlockSpec((tb, N, XD), lambda b: (b, 0, 0)),   # x tile, real x_dim width
                pl.BlockSpec(wc1.shape, lambda b: (0, 0)),        # resident [Gamma|Lambda] 1
                pl.BlockSpec(b1.shape, lambda b: (0, 0)),
                pl.BlockSpec(wc2.shape, lambda b: (0, 0)),        # resident [Gamma|Lambda] 2
                pl.BlockSpec(b2.shape, lambda b: (0, 0)),
                pl.BlockSpec(wc3.shape, lambda b: (0, 0)),        # resident [Gamma|Lambda] 3
                pl.BlockSpec(b3.shape, lambda b: (0, 0)),
                pl.BlockSpec(rw1.shape, lambda b: (0, 0)),        # resident ro weights
                pl.BlockSpec(rb1.shape, lambda b: (0, 0)),
                pl.BlockSpec(rw2.shape, lambda b: (0, 0)),
                pl.BlockSpec(rb2.shape, lambda b: (0, 0)),
            ],
            out_specs=pl.BlockSpec((tb, ZP), lambda b: (b, 0)),
        ),
        compiler_params=pltpu.CompilerParams(
            dimension_semantics=("parallel",),
            vmem_limit_bytes=int(vmem_limit),
        ),
        cost_estimate=pl.CostEstimate(
            flops=int(flops),
            transcendentals=int(transcendentals),
            bytes_accessed=int(bytes_accessed),
        ),
    )(x, wc1, b1, wc2, b2, wc3, b3, rw1, rb1, rw2, rb2)
    return out_p[:, :z1]


# ---------------------------------------------------------------------------
# Pure-JAX reference (mirrors the PyTorch module)
# ---------------------------------------------------------------------------
def g_inv_reference(x, params, pool="mean"):
    hp = jax.lax.Precision.HIGHEST
    h = x
    for wg, bg, wl in params["phi"]:
        if pool == "max":
            xm = jnp.max(h, axis=1, keepdims=True)
            h = jnp.dot(h, wg, precision=hp) + bg - jnp.dot(xm, wl, precision=hp)
        elif pool == "max1":
            xm = jnp.max(h, axis=1, keepdims=True)
            h = jnp.dot(h - xm, wg, precision=hp) + bg
        else:  # mean
            xm = jnp.mean(h, axis=1, keepdims=True)
            h = jnp.dot(h, wg, precision=hp) + bg - jnp.dot(xm, wl, precision=hp)
        h = jax.nn.softplus(h)
    s = jnp.max(h, axis=1)
    r = jax.nn.softplus(jnp.dot(s, params["ro_w1"], precision=hp) + params["ro_b1"])
    return jnp.dot(r, params["ro_w2"], precision=hp) + params["ro_b2"]


if __name__ == "__main__":
    B, N = 4, 8                 # batch of point-sets, set size (N multiple of 8 keeps reshapes free)
    x_dim, d_dim, z1_dim = 3, 32, 16

    key = jax.random.PRNGKey(0)
    keys = jax.random.split(key, 16)

    x = jax.random.normal(keys[0], (B, N, x_dim), dtype=jnp.float32)

    def lin(k, i, o, scale=0.1):
        return jax.random.normal(k, (i, o), dtype=jnp.float32) * scale

    def vec(k, o, scale=0.1):
        return jax.random.normal(k, (o,), dtype=jnp.float32) * scale

    params = {
        "phi": [
            (lin(keys[1], x_dim, d_dim), vec(keys[2], d_dim), lin(keys[3], x_dim, d_dim)),
            (lin(keys[4], d_dim, d_dim), vec(keys[5], d_dim), lin(keys[6], d_dim, d_dim)),
            (lin(keys[7], d_dim, d_dim), vec(keys[8], d_dim), lin(keys[9], d_dim, d_dim)),
        ],
        "ro_w1": lin(keys[10], d_dim, d_dim),
        "ro_b1": vec(keys[11], d_dim),
        "ro_w2": lin(keys[12], d_dim, z1_dim),
        "ro_b2": vec(keys[13], z1_dim),
    }

    # 'mean' is the module default; 'max' covers PermEqui2_max; 'max1' covers PermEqui1_max.
    for pool in ("mean", "max", "max1"):
        prep = prepare_params(params, pool=pool)       # one-time parameter prep (padding hoisted)
        out = jax.block_until_ready(g_inv_forward(x, prep))
        ref = g_inv_reference(x, params, pool=pool)
        assert out.shape == (B, z1_dim)
        assert jnp.allclose(out, ref, atol=1e-3, rtol=1e-3), f"mismatch vs reference (pool={pool})"

    print("KERNEL_OK")
</pallas_src>

<mosaic_0001>
module attributes {stable_mosaic.version = 11 : i64} {
  func.func @_g_inv_kernel(%arg0: i32, %arg1: memref<4x8x3xf32, #tpu.memory_space<vmem>>, %arg2: memref<3x256xf32, #tpu.memory_space<vmem>>, %arg3: memref<1x128xf32, #tpu.memory_space<vmem>>, %arg4: memref<128x256xf32, #tpu.memory_space<vmem>>, %arg5: memref<1x128xf32, #tpu.memory_space<vmem>>, %arg6: memref<128x256xf32, #tpu.memory_space<vmem>>, %arg7: memref<1x128xf32, #tpu.memory_space<vmem>>, %arg8: memref<128x128xf32, #tpu.memory_space<vmem>>, %arg9: memref<1x128xf32, #tpu.memory_space<vmem>>, %arg10: memref<128x128xf32, #tpu.memory_space<vmem>>, %arg11: memref<1x128xf32, #tpu.memory_space<vmem>>, %arg12: memref<4x128xf32, #tpu.memory_space<vmem>>) attributes {dimension_semantics = [#tpu.dimension_semantics<parallel>], iteration_bounds = array<i64: 1>, scalar_prefetch = 0 : i64, scratch_operands = 0 : i64, tpu.core_type = #tpu.core_type<tc>, window_params = [{transform_indices = @transform_0, window_bounds = array<i64: 4, 8, 3>}, {pipeline_mode = #tpu.pipeline_mode<synchronous>, transform_indices = @transform_1, window_bounds = array<i64: 3, 256>}, {pipeline_mode = #tpu.pipeline_mode<synchronous>, transform_indices = @transform_2, window_bounds = array<i64: 1, 128>}, {pipeline_mode = #tpu.pipeline_mode<synchronous>, transform_indices = @transform_3, window_bounds = array<i64: 128, 256>}, {pipeline_mode = #tpu.pipeline_mode<synchronous>, transform_indices = @transform_4, window_bounds = array<i64: 1, 128>}, {pipeline_mode = #tpu.pipeline_mode<synchronous>, transform_indices = @transform_5, window_bounds = array<i64: 128, 256>}, {pipeline_mode = #tpu.pipeline_mode<synchronous>, transform_indices = @transform_6, window_bounds = array<i64: 1, 128>}, {pipeline_mode = #tpu.pipeline_mode<synchronous>, transform_indices = @transform_7, window_bounds = array<i64: 128, 128>}, {pipeline_mode = #tpu.pipeline_mode<synchronous>, transform_indices = @transform_8, window_bounds = array<i64: 1, 128>}, {pipeline_mode = #tpu.pipeline_mode<synchronous>, transform_indices = @transform_9, window_bounds = array<i64: 128, 128>}, {pipeline_mode = #tpu.pipeline_mode<synchronous>, transform_indices = @transform_10, window_bounds = array<i64: 1, 128>}, {transform_indices = @transform_11, window_bounds = array<i64: 4, 128>}]} {
    %c0 = arith.constant 0 : index
    %c0_0 = arith.constant 0 : index
    %c0_1 = arith.constant 0 : index
    %0 = vector.load %arg1[%c0, %c0_0, %c0_1] : memref<4x8x3xf32, #tpu.memory_space<vmem>>, vector<4x8x3xf32>
    %1 = vector.shape_cast %0 : vector<4x8x3xf32> to vector<32x3xf32>
    %c0_2 = arith.constant 0 : index
    %c0_3 = arith.constant 0 : index
    %2 = vector.load %arg2[%c0_2, %c0_3] : memref<3x256xf32, #tpu.memory_space<vmem>>, vector<3x256xf32>
    %cst = arith.constant dense<0.000000e+00> : vector<32x256xf32>
    %3 = tpu.matmul %1, %2, %cst {dimension_numbers = #tpu.dot_dimension_numbers<[1], [0], [0], [1], [0, 0, 1, 1], [], []>} : vector<32x3xf32>, vector<3x256xf32>, vector<32x256xf32> -> vector<32x256xf32>
    %4 = vector.extract_strided_slice %3 {offsets = [0, 0], sizes = [32, 128], strides = [1, 1]} : vector<32x256xf32> to vector<32x128xf32>
    %5 = vector.extract_strided_slice %3 {offsets = [0, 128], sizes = [32, 128], strides = [1, 1]} : vector<32x256xf32> to vector<32x128xf32>
    %6 = vector.shape_cast %5 : vector<32x128xf32> to vector<4x8x128xf32>
    %cst_4 = arith.constant dense<0.000000e+00> : vector<4x128xf32>
    %7 = vector.multi_reduction <add>, %6, %cst_4 [1] : vector<4x8x128xf32> to vector<4x128xf32>
    %cst_5 = arith.constant 8.000000e+00 : f32
    %8 = vector.broadcast %cst_5 : f32 to vector<4x128xf32>
    %9 = arith.divf %7, %8 : vector<4x128xf32>
    %c0_6 = arith.constant 0 : index
    %c0_7 = arith.constant 0 : index
    %10 = vector.load %arg3[%c0_6, %c0_7] : memref<1x128xf32, #tpu.memory_space<vmem>>, vector<1x128xf32>
    %11 = vector.broadcast %10 : vector<1x128xf32> to vector<4x128xf32>
    %12 = arith.subf %11, %9 : vector<4x128xf32>
    %13 = vector.shape_cast %4 : vector<32x128xf32> to vector<4x8x128xf32>
    %14 = vector.shape_cast %12 : vector<4x128xf32> to vector<4x1x128xf32>
    %15 = vector.broadcast %14 : vector<4x1x128xf32> to vector<4x8x128xf32>
    %16 = arith.addf %13, %15 : vector<4x8x128xf32>
    %cst_8 = arith.constant 0.000000e+00 : f32
    %17 = vector.broadcast %cst_8 : f32 to vector<4x8x128xf32>
    %18 = arith.maximumf %16, %17 : vector<4x8x128xf32>
    %19 = math.absf %16 : vector<4x8x128xf32>
    %cst_9 = arith.constant 0.000000e+00 : f32
    %20 = vector.broadcast %cst_9 : f32 to vector<4x8x128xf32>
    %21 = arith.subf %20, %19 : vector<4x8x128xf32>
    %22 = math.exp %21 : vector<4x8x128xf32>
    %cst_10 = arith.constant 1.000000e+00 : f32
    %23 = vector.broadcast %cst_10 : f32 to vector<4x8x128xf32>
    %24 = arith.addf %23, %22 : vector<4x8x128xf32>
    %25 = math.log %24 : vector<4x8x128xf32>
    %26 = arith.addf %18, %25 : vector<4x8x128xf32>
    %27 = vector.shape_cast %26 : vector<4x8x128xf32> to vector<32x128xf32>
    %c0_11 = arith.constant 0 : index
    %c0_12 = arith.constant 0 : index
    %28 = vector.load %arg4[%c0_11, %c0_12] : memref<128x256xf32, #tpu.memory_space<vmem>>, vector<128x256xf32>
    %cst_13 = arith.constant dense<0.000000e+00> : vector<32x256xf32>
    %29 = tpu.matmul %27, %28, %cst_13 {dimension_numbers = #tpu.dot_dimension_numbers<[1], [0], [0], [1], [0, 0, 1, 1], [], []>} : vector<32x128xf32>, vector<128x256xf32>, vector<32x256xf32> -> vector<32x256xf32>
    %30 = vector.extract_strided_slice %29 {offsets = [0, 0], sizes = [32, 128], strides = [1, 1]} : vector<32x256xf32> to vector<32x128xf32>
    %31 = vector.extract_strided_slice %29 {offsets = [0, 128], sizes = [32, 128], strides = [1, 1]} : vector<32x256xf32> to vector<32x128xf32>
    %32 = vector.shape_cast %31 : vector<32x128xf32> to vector<4x8x128xf32>
    %cst_14 = arith.constant dense<0.000000e+00> : vector<4x128xf32>
    %33 = vector.multi_reduction <add>, %32, %cst_14 [1] : vector<4x8x128xf32> to vector<4x128xf32>
    %cst_15 = arith.constant 8.000000e+00 : f32
    %34 = vector.broadcast %cst_15 : f32 to vector<4x128xf32>
    %35 = arith.divf %33, %34 : vector<4x128xf32>
    %c0_16 = arith.constant 0 : index
    %c0_17 = arith.constant 0 : index
    %36 = vector.load %arg5[%c0_16, %c0_17] : memref<1x128xf32, #tpu.memory_space<vmem>>, vector<1x128xf32>
    %37 = vector.broadcast %36 : vector<1x128xf32> to vector<4x128xf32>
    %38 = arith.subf %37, %35 : vector<4x128xf32>
    %39 = vector.shape_cast %30 : vector<32x128xf32> to vector<4x8x128xf32>
    %40 = vector.shape_cast %38 : vector<4x128xf32> to vector<4x1x128xf32>
    %41 = vector.broadcast %40 : vector<4x1x128xf32> to vector<4x8x128xf32>
    %42 = arith.addf %39, %41 : vector<4x8x128xf32>
    %cst_18 = arith.constant 0.000000e+00 : f32
    %43 = vector.broadcast %cst_18 : f32 to vector<4x8x128xf32>
    %44 = arith.maximumf %42, %43 : vector<4x8x128xf32>
    %45 = math.absf %42 : vector<4x8x128xf32>
    %cst_19 = arith.constant 0.000000e+00 : f32
    %46 = vector.broadcast %cst_19 : f32 to vector<4x8x128xf32>
    %47 = arith.subf %46, %45 : vector<4x8x128xf32>
    %48 = math.exp %47 : vector<4x8x128xf32>
    %cst_20 = arith.constant 1.000000e+00 : f32
    %49 = vector.broadcast %cst_20 : f32 to vector<4x8x128xf32>
    %50 = arith.addf %49, %48 : vector<4x8x128xf32>
    %51 = math.log %50 : vector<4x8x128xf32>
    %52 = arith.addf %44, %51 : vector<4x8x128xf32>
    %53 = vector.shape_cast %52 : vector<4x8x128xf32> to vector<32x128xf32>
    %c0_21 = arith.constant 0 : index
    %c0_22 = arith.constant 0 : index
    %54 = vector.load %arg6[%c0_21, %c0_22] : memref<128x256xf32, #tpu.memory_space<vmem>>, vector<128x256xf32>
    %cst_23 = arith.constant dense<0.000000e+00> : vector<32x256xf32>
    %55 = tpu.matmul %53, %54, %cst_23 {dimension_numbers = #tpu.dot_dimension_numbers<[1], [0], [0], [1], [0, 0, 1, 1], [], []>} : vector<32x128xf32>, vector<128x256xf32>, vector<32x256xf32> -> vector<32x256xf32>
    %56 = vector.extract_strided_slice %55 {offsets = [0, 0], sizes = [32, 128], strides = [1, 1]} : vector<32x256xf32> to vector<32x128xf32>
    %57 = vector.extract_strided_slice %55 {offsets = [0, 128], sizes = [32, 128], strides = [1, 1]} : vector<32x256xf32> to vector<32x128xf32>
    %58 = vector.shape_cast %57 : vector<32x128xf32> to vector<4x8x128xf32>
    %cst_24 = arith.constant dense<0.000000e+00> : vector<4x128xf32>
    %59 = vector.multi_reduction <add>, %58, %cst_24 [1] : vector<4x8x128xf32> to vector<4x128xf32>
    %cst_25 = arith.constant 8.000000e+00 : f32
    %60 = vector.broadcast %cst_25 : f32 to vector<4x128xf32>
    %61 = arith.divf %59, %60 : vector<4x128xf32>
    %c0_26 = arith.constant 0 : index
    %c0_27 = arith.constant 0 : index
    %62 = vector.load %arg7[%c0_26, %c0_27] : memref<1x128xf32, #tpu.memory_space<vmem>>, vector<1x128xf32>
    %63 = vector.broadcast %62 : vector<1x128xf32> to vector<4x128xf32>
    %64 = arith.subf %63, %61 : vector<4x128xf32>
    %65 = vector.shape_cast %56 : vector<32x128xf32> to vector<4x8x128xf32>
    %66 = vector.shape_cast %64 : vector<4x128xf32> to vector<4x1x128xf32>
    %67 = vector.broadcast %66 : vector<4x1x128xf32> to vector<4x8x128xf32>
    %68 = arith.addf %65, %67 : vector<4x8x128xf32>
    %cst_28 = arith.constant 0.000000e+00 : f32
    %69 = vector.broadcast %cst_28 : f32 to vector<4x8x128xf32>
    %70 = arith.maximumf %68, %69 : vector<4x8x128xf32>
    %71 = math.absf %68 : vector<4x8x128xf32>
    %cst_29 = arith.constant 0.000000e+00 : f32
    %72 = vector.broadcast %cst_29 : f32 to vector<4x8x128xf32>
    %73 = arith.subf %72, %71 : vector<4x8x128xf32>
    %74 = math.exp %73 : vector<4x8x128xf32>
    %cst_30 = arith.constant 1.000000e+00 : f32
    %75 = vector.broadcast %cst_30 : f32 to vector<4x8x128xf32>
    %76 = arith.addf %75, %74 : vector<4x8x128xf32>
    %77 = math.log %76 : vector<4x8x128xf32>
    %78 = arith.addf %70, %77 : vector<4x8x128xf32>
    %cst_31 = arith.constant dense<0xFF800000> : vector<4x128xf32>
    %79 = vector.multi_reduction <maximumf>, %78, %cst_31 [1] : vector<4x8x128xf32> to vector<4x128xf32>
    %c0_32 = arith.constant 0 : index
    %c0_33 = arith.constant 0 : index
    %80 = vector.load %arg8[%c0_32, %c0_33] : memref<128x128xf32, #tpu.memory_space<vmem>>, vector<128x128xf32>
    %cst_34 = arith.constant dense<0.000000e+00> : vector<4x128xf32>
    %81 = tpu.matmul %79, %80, %cst_34 {dimension_numbers = #tpu.dot_dimension_numbers<[1], [0], [0], [1], [0, 0, 1, 1], [], []>} : vector<4x128xf32>, vector<128x128xf32>, vector<4x128xf32> -> vector<4x128xf32>
    %c0_35 = arith.constant 0 : index
    %c0_36 = arith.constant 0 : index
    %82 = vector.load %arg9[%c0_35, %c0_36] : memref<1x128xf32, #tpu.memory_space<vmem>>, vector<1x128xf32>
    %83 = vector.broadcast %82 : vector<1x128xf32> to vector<4x128xf32>
    %84 = arith.addf %81, %83 : vector<4x128xf32>
    %cst_37 = arith.constant 0.000000e+00 : f32
    %85 = vector.broadcast %cst_37 : f32 to vector<4x128xf32>
    %86 = arith.maximumf %84, %85 : vector<4x128xf32>
    %87 = math.absf %84 : vector<4x128xf32>
    %cst_38 = arith.constant 0.000000e+00 : f32
    %88 = vector.broadcast %cst_38 : f32 to vector<4x128xf32>
    %89 = arith.subf %88, %87 : vector<4x128xf32>
    %90 = math.exp %89 : vector<4x128xf32>
    %cst_39 = arith.constant 1.000000e+00 : f32
    %91 = vector.broadcast %cst_39 : f32 to vector<4x128xf32>
    %92 = arith.addf %91, %90 : vector<4x128xf32>
    %93 = math.log %92 : vector<4x128xf32>
    %94 = arith.addf %86, %93 : vector<4x128xf32>
    %c0_40 = arith.constant 0 : index
    %c0_41 = arith.constant 0 : index
    %95 = vector.load %arg10[%c0_40, %c0_41] : memref<128x128xf32, #tpu.memory_space<vmem>>, vector<128x128xf32>
    %cst_42 = arith.constant dense<0.000000e+00> : vector<4x128xf32>
    %96 = tpu.matmul %94, %95, %cst_42 {dimension_numbers = #tpu.dot_dimension_numbers<[1], [0], [0], [1], [0, 0, 1, 1], [], []>} : vector<4x128xf32>, vector<128x128xf32>, vector<4x128xf32> -> vector<4x128xf32>
    %c0_43 = arith.constant 0 : index
    %c0_44 = arith.constant 0 : index
    %97 = vector.load %arg11[%c0_43, %c0_44] : memref<1x128xf32, #tpu.memory_space<vmem>>, vector<1x128xf32>
    %98 = vector.broadcast %97 : vector<1x128xf32> to vector<4x128xf32>
    %99 = arith.addf %96, %98 : vector<4x128xf32>
    %c0_45 = arith.constant 0 : index
    %c0_46 = arith.constant 0 : index
    %100 = vector.load %arg12[%c0_45, %c0_46] : memref<4x128xf32, #tpu.memory_space<vmem>>, vector<4x128xf32>
    tpu.vector_store %arg12[%c0_45, %c0_46], %99 {strides = array<i32>} : memref<4x128xf32, #tpu.memory_space<vmem>>, vector<4x128xf32>,
    return
  }
  func.func @transform_0(%arg0: i32) -> (i32, i32, i32) {
    %c0_i32 = arith.constant 0 : i32
    %c0_i32_0 = arith.constant 0 : i32
    %c0_i32_1 = arith.constant 0 : i32
    return %arg0, %c0_i32, %c0_i32_0 : i32, i32, i32
  }
  func.func @transform_1(%arg0: i32) -> (i32, i32) {
    %c0_i32 = arith.constant 0 : i32
    %c0_i32_0 = arith.constant 0 : i32
    %c0_i32_1 = arith.constant 0 : i32
    return %c0_i32, %c0_i32_0 : i32, i32
  }
  func.func @transform_2(%arg0: i32) -> (i32, i32) {
    %c0_i32 = arith.constant 0 : i32
    %c0_i32_0 = arith.constant 0 : i32
    %c0_i32_1 = arith.constant 0 : i32
    return %c0_i32, %c0_i32_0 : i32, i32
  }
  func.func @transform_3(%arg0: i32) -> (i32, i32) {
    %c0_i32 = arith.constant 0 : i32
    %c0_i32_0 = arith.constant 0 : i32
    %c0_i32_1 = arith.constant 0 : i32
    return %c0_i32, %c0_i32_0 : i32, i32
  }
  func.func @transform_4(%arg0: i32) -> (i32, i32) {
    %c0_i32 = arith.constant 0 : i32
    %c0_i32_0 = arith.constant 0 : i32
    %c0_i32_1 = arith.constant 0 : i32
    return %c0_i32, %c0_i32_0 : i32, i32
  }
  func.func @transform_5(%arg0: i32) -> (i32, i32) {
    %c0_i32 = arith.constant 0 : i32
    %c0_i32_0 = arith.constant 0 : i32
    %c0_i32_1 = arith.constant 0 : i32
    return %c0_i32, %c0_i32_0 : i32, i32
  }
  func.func @transform_6(%arg0: i32) -> (i32, i32) {
    %c0_i32 = arith.constant 0 : i32
    %c0_i32_0 = arith.constant 0 : i32
    %c0_i32_1 = arith.constant 0 : i32
    return %c0_i32, %c0_i32_0 : i32, i32
  }
  func.func @transform_7(%arg0: i32) -> (i32, i32) {
    %c0_i32 = arith.constant 0 : i32
    %c0_i32_0 = arith.constant 0 : i32
    %c0_i32_1 = arith.constant 0 : i32
    return %c0_i32, %c0_i32_0 : i32, i32
  }
  func.func @transform_8(%arg0: i32) -> (i32, i32) {
    %c0_i32 = arith.constant 0 : i32
    %c0_i32_0 = arith.constant 0 : i32
    %c0_i32_1 = arith.constant 0 : i32
    return %c0_i32, %c0_i32_0 : i32, i32
  }
  func.func @transform_9(%arg0: i32) -> (i32, i32) {
    %c0_i32 = arith.constant 0 : i32
    %c0_i32_0 = arith.constant 0 : i32
    %c0_i32_1 = arith.constant 0 : i32
    return %c0_i32, %c0_i32_0 : i32, i32
  }
  func.func @transform_10(%arg0: i32) -> (i32, i32) {
    %c0_i32 = arith.constant 0 : i32
    %c0_i32_0 = arith.constant 0 : i32
    %c0_i32_1 = arith.constant 0 : i32
    return %c0_i32, %c0_i32_0 : i32, i32
  }
  func.func @transform_11(%arg0: i32) -> (i32, i32) {
    %c0_i32 = arith.constant 0 : i32
    %c0_i32_0 = arith.constant 0 : i32
    return %arg0, %c0_i32 : i32, i32
  }
}

</mosaic_0001>

<bundles_post_ra>
// kernel: tpu_custom_call.1
= control target key start
LH: loop header
LB: loop body
LE: loop exit
PB: predicated region body
PF: predicated region fallthrough
CT: control target
= control target key end

     0   :  { %16 = vsyncpa [#allocation3], 0  ;;  %s1734_s0 = inlined_call_operand.vmem [shape: f32[4,8,3], index: 0, kind: input, shape index: {}]   ;;  %s1735_s1 = inlined_call_operand.vmem [shape: f32[3,256], index: 1, kind: input, shape index: {}]   ;;  %s1736_s2 = inlined_call_operand.vmem [shape: f32[1,128], index: 2, kind: input, shape index: {}]   ;;  %s1737_s3 = inlined_call_operand.hbm [shape: f32[128,256], index: 3, kind: input, shape index: {}]   ;;  %s1738_s4 = inlined_call_operand.vmem [shape: f32[1,128], index: 4, kind: input, shape index: {}]   ;;  %s1739_s5 = inlined_call_operand.hbm [shape: f32[128,256], index: 5, kind: input, shape index: {}]   ;;  %s1740_s6 = inlined_call_operand.vmem [shape: f32[1,128], index: 6, kind: input, shape index: {}]   ;;  %s1741_s7 = inlined_call_operand.hbm [shape: f32[128,128], index: 7, kind: input, shape index: {}]   ;;  %s1742_s8 = inlined_call_operand.vmem [shape: f32[1,128], index: 8, kind: input, shape index: {}]   ;;  %s1743_s9 = inlined_call_operand.hbm [shape: f32[128,128], index: 9, kind: input, shape index: {}]   ;;  %s1744_s10 = inlined_call_operand.vmem [shape: f32[1,128], index: 10, kind: input, shape index: {}]   ;;  %s1745_s11 = inlined_call_operand.hbm [shape: f32[4,128], index: 11, kind: output, shape index: {}]  }
   0x1   :  { %17 = vsyncpa [#allocation6], 0 }
   0x2   :  { %18 = vsyncpa [#allocation9], 0 }
   0x3   :  { %19 = vsyncpa [#allocation4], 0  ;;  %s1497_s17 = smov [#allocation5]   ;;  %s1498_s19 = smov [#allocation2]  }
   0x4   :  { %s45_s18 = sshll.u32 %s1497_s17, 4  ;;  %s31_s20 = sshll.u32 %s1498_s19, 4  ;;  %s46_s18 = int_to_ptr.vmem [resolvable:$true] %s45_s18  ;;  %s1570_s20 = int_to_ptr.vmem [resolvable:$true] %s31_s20 }
   0x5   :  { %s1379_s23 = scalar_lea.hbm %s1739_s5, 4096 }
   0x6   :  { %p1380_p0 = scmp.ne.s32.totalorder %s1739_s5, %s1379_s23  ;;  %p1383_p1 = scmp.lt.u32.totalorder %s1379_s23, %s1739_s5 }
   0x8   :  { %p1385_p2 = pnand %p1383_p1, %p1380_p0 }
   0xa   :  { %1388 = shalt.err (!%p1385_p2)
}
   0xb   :  { %s1389_s28 = scalar_lea.vmem %s46_s18, 4096  ;;  %p1394_p4 = scmp.lt.s32.totalorder %s46_s18, %s46_s18 }
   0xc   :  { %p1390_p3 = scmp.ne.s32.totalorder %s46_s18, %s1389_s28  ;;  %p1395_p5 = scmp.lt.s32.totalorder %s1389_s28, %s1389_s28 }
   0xe   :  { %p1396_p6 = por %p1395_p5, %p1394_p4 }
  0x10   :  { %p1397_p7 = pnand %p1396_p6, %p1390_p3 }
  0x12   :  { %1400 = shalt.err (!%p1397_p7)
}
  0x13   :  { %s1499_s29 = smov 256   ;;  %s1500_s30 = smov 16  }
  0x14   :  { %51 = dma.hbm_to_vmem [thread:$0]  %s1739_s5, 4096, %s46_s18, [#allocation6], %s1499_s29, %s1499_s29, %s1500_s30  }
  0x15   :  { %s1401_s16 = scalar_lea.hbm %s1737_s3, 4096 }
  0x16   :  { %p1402_p8 = scmp.ne.s32.totalorder %s1737_s3, %s1401_s16  ;;  %p1405_p9 = scmp.lt.u32.totalorder %s1401_s16, %s1737_s3 }
  0x18   :  { %p1407_p10 = pnand %p1405_p9, %p1402_p8 }
  0x1a   :  { %1410 = shalt.err (!%p1407_p10)
}
  0x1b   :  { %s1411_s23 = scalar_lea.vmem %s1570_s20, 4096  ;;  %p1416_p12 = scmp.lt.s32.totalorder %s1570_s20, %s1570_s20 }
  0x1c   :  { %p1412_p11 = scmp.ne.s32.totalorder %s1570_s20, %s1411_s23  ;;  %p1417_p13 = scmp.lt.s32.totalorder %s1411_s23, %s1411_s23 }
  0x1e   :  { %p1418_p0 = por %p1417_p13, %p1416_p12 }
  0x20   :  { %p1419_p1 = pnand %p1418_p0, %p1412_p11 }
  0x22   :  { %1422 = shalt.err (!%p1419_p1)
}
  0x23   :  { %37 = dma.hbm_to_vmem [thread:$0]  %s1737_s3, 4096, %s1570_s20, [#allocation3], %s1499_s29, %s1499_s29, %s1500_s30  }
  0x24   :  { %s1501_s24 = smov [#allocation7]   ;;  %s1423_s28 = scalar_lea.hbm %s1741_s7, 2048 }
  0x25   :  { %s59_s25 = sshll.u32 %s1501_s24, 4  ;;  %p1424_p2 = scmp.ne.s32.totalorder %s1741_s7, %s1423_s28  ;;  %s60_s25 = int_to_ptr.vmem [resolvable:$true] %s59_s25 }
  0x26   :  { %p1427_p3 = scmp.lt.u32.totalorder %s1423_s28, %s1741_s7 }
  0x28   :  { %p1429_p4 = pnand %p1427_p3, %p1424_p2 }
  0x2a   :  { %1432 = shalt.err (!%p1429_p4)
}
  0x2b   :  { %s1433_s16 = scalar_lea.vmem %s60_s25, 2048  ;;  %p1438_p6 = scmp.lt.s32.totalorder %s60_s25, %s60_s25 }
  0x2c   :  { %p1434_p5 = scmp.ne.s32.totalorder %s60_s25, %s1433_s16  ;;  %p1439_p7 = scmp.lt.s32.totalorder %s1433_s16, %s1433_s16 }
  0x2e   :  { %p1440_p8 = por %p1439_p7, %p1438_p6 }
  0x30   :  { %p1441_p9 = pnand %p1440_p8, %p1434_p5 }
  0x32   :  { %1444 = shalt.err (!%p1441_p9)
}
  0x33   :  { %s1502_s3 = smov 128   ;;  %s1503_s20 = smov 8  }
  0x34   :  { %65 = dma.hbm_to_vmem [thread:$0]  %s1741_s7, 2048, %s60_s25, [#allocation6], %s1502_s3, %s1502_s3, %s1503_s20  }
  0x35   :  { %s1504_s17 = smov [#allocation8]   ;;  %s1445_s23 = scalar_lea.hbm %s1743_s9, 2048 }
  0x36   :  { %s73_s19 = sshll.u32 %s1504_s17, 4  ;;  %p1446_p10 = scmp.ne.s32.totalorder %s1743_s9, %s1445_s23  ;;  %s74_s19 = int_to_ptr.vmem [resolvable:$true] %s73_s19 }
  0x37   :  { %p1449_p11 = scmp.lt.u32.totalorder %s1445_s23, %s1743_s9 }
  0x39   :  { %p1451_p12 = pnand %p1449_p11, %p1446_p10 }
  0x3b   :  { %1454 = shalt.err (!%p1451_p12)
}
  0x3c   :  { %s1455_s27 = scalar_lea.vmem %s74_s19, 2048  ;;  %p1460_p0 = scmp.lt.s32.totalorder %s74_s19, %s74_s19 }
  0x3d   :  { %p1456_p13 = scmp.ne.s32.totalorder %s74_s19, %s1455_s27  ;;  %p1461_p1 = scmp.lt.s32.totalorder %s1455_s27, %s1455_s27 }
  0x3f   :  { %p1462_p2 = por %p1461_p1, %p1460_p0 }
  0x41   :  { %p1463_p3 = pnand %p1462_p2, %p1456_p13 }
  0x43   :  { %1466 = shalt.err (!%p1463_p3)
}
  0x44   :  { %79 = dma.hbm_to_vmem [thread:$0]  %s1743_s9, 2048, %s74_s19, [#allocation9], %s1502_s3, %s1502_s3, %s1503_s20  }
  0x45   :  { %1489 = dma.done.wait [#allocation3], 4096  }
  0x46   :  { %1490 = vsyncadd [#allocation3], 4294963200 }
  0x47   :  { %1491 = dma.done.wait [#allocation6], 6144  }
  0x48   :  { %1492 = vsyncadd [#allocation6], 4294961152 }
  0x49   :  { %1493 = dma.done.wait [#allocation9], 2048  }
  0x4a   :  { %1494 = vsyncadd [#allocation9], 4294965248  ;;  %v1505_v0 = vmov 0.0   ;;  %v98_v1 = vld [vmem:[%s1735_s1] sm:$0x77]  ;;  %vm114_vm0 = vcmask 1042432  }
  0x4b   :  { %183 = vmatprep.mubr.f32.mxu0 %v1505_v0  ;;  %437 = vmatprep.mubr.f32.mxu1 %v1505_v0  ;;  %v100_v2 = vcombine.high %v98_v1, %v98_v1  ;;  %v94_v3 = vld [vmem:[%s1734_s0] sm:$0xff]  ;;  %vm101_vm1 = vcmask 23552   ;;  %v95_v4 = vld [vmem:[%s1734_s0 + $0x8] sm:$0xff]  ;;  %v96_v5 = vld [vmem:[%s1734_s0 + $0x10] sm:$0xff]  ;;  %vm248_vm2 = vcmask 1041409   ;;  %vm250_vm3 = vcmask 1042434  }
  0x4c   :  { %v97_v6 = vld [vmem:[%s1734_s0 + $0x18] sm:$0xff]  ;;  %v342_v7 = vld [vmem:[#allocation2 + $0x8] sm:$0xff]  ;;  %v341_v9 = vld [vmem:[#allocation2] sm:$0xff]  ;;  %vm252_vm4 = vcmask 1043459   ;;  %vm1508_vm5 = vmmov 0  }
  0x4d   :  { %1086 = vmatprep.subr.msk.mxu0 %vm114_vm0, %v100_v2  ;;  %v344_v8 = vld [vmem:[#allocation2 + $0x18] sm:$0xff]  ;;  %v343_v11 = vld [vmem:[#allocation2 + $0x10] sm:$0xff]  ;;  %v346_v12 = vld [vmem:[#allocation2 + $0x28] sm:$0xff] }
  0x4e   :  { %1087 = vmatpush1.msk.msra.mxu0 %vm114_vm0, %v98_v1  ;;  %v1201_v10 = vpack.c.bf16 %v344_v8, %v342_v7  ;;  %v348_v13 = vld [vmem:[#allocation2 + $0x38] sm:$0xff]  ;;  %v1203_v14 = vpack.c.bf16 %v343_v11, %v341_v9  ;;  %v345_v16 = vld [vmem:[#allocation2 + $0x20] sm:$0xff]  ;;  %v347_v17 = vld [vmem:[#allocation2 + $0x30] sm:$0xff] }
  0x4f   :  { %1088 = vmatmul.mubr.msk.f32.vlgmr.msra.gmra.mrb[0].mxu0 %vm101_vm1, %v94_v3  ;;  %v1205_v15 = vpack.c.bf16 %v348_v13, %v346_v12  ;;  %v350_v18 = vld [vmem:[#allocation2 + $0x48] sm:$0xff]  ;;  %v352_v19 = vld [vmem:[#allocation2 + $0x58] sm:$0xff]  ;;  %v1207_v20 = vpack.c.bf16 %v347_v17, %v345_v16  ;;  %v349_v22 = vld [vmem:[#allocation2 + $0x40] sm:$0xff] }
  0x50   :  { %189 = vmatprep.mubr.f32.mxu0 %v1505_v0  ;;  %1202 = vmatprep.subr.bf16.mxu1 %v1201_v10  ;;  %v1209_v21 = vpack.c.bf16 %v352_v19, %v350_v18  ;;  %v351_v23 = vld [vmem:[#allocation2 + $0x50] sm:$0xff]  ;;  %v354_v24 = vld [vmem:[#allocation2 + $0x68] sm:$0xff]  ;;  %v356_v25 = vld [vmem:[#allocation2 + $0x78] sm:$0xff] }
  0x51   :  { %1204 = vmatpush1.bf16.msra.mxu1 %v1203_v14  ;;  %v1211_v26 = vpack.c.bf16 %v351_v23, %v349_v22  ;;  %v1213_v27 = vpack.c.bf16 %v356_v25, %v354_v24  ;;  %v353_v28 = vld [vmem:[#allocation2 + $0x60] sm:$0xff]  ;;  %v355_v29 = vld [vmem:[#allocation2 + $0x70] sm:$0xff]  ;;  %v358_v30 = vld [vmem:[#allocation2 + $0x88] sm:$0xff]  ;;  %v1506_v22 = vmov 1966171168   ;;  %v260_v24 = vlaneseq }
  0x52   :  { %1206 = vmatprep.subr.bf16.mxu1 %v1205_v15  ;;  %v360_v31 = vld [vmem:[#allocation2 + $0x98] sm:$0xff]  ;;  %v1215_v32 = vpack.c.bf16 %v355_v29, %v353_v28  ;;  %v357_v34 = vld [vmem:[#allocation2 + $0x80] sm:$0xff]  ;;  %v359_v35 = vld [vmem:[#allocation2 + $0x90] sm:$0xff]  ;;  %v258_v23 = vunpack.c.l.s4 %v1506_v22 }
  0x53   :  { %1089 = vmatmul.mubr.msk.f32.gmra.mrb[2].mxu0 %vm101_vm1, %v95_v4  ;;  %v1217_v33 = vpack.c.bf16 %v360_v31, %v358_v30  ;;  %v362_v36 = vld [vmem:[#allocation2 + $0xa8] sm:$0xff]  ;;  %v364_v37 = vld [vmem:[#allocation2 + $0xb8] sm:$0xff]  ;;  %v1219_v38 = vpack.c.bf16 %v359_v35, %v357_v34  ;;  %v361_v40 = vld [vmem:[#allocation2 + $0xa0] sm:$0xff]  ;;  %v261_v31 = vshrl.u32 %v260_v24, 7 }
  0x54   :  { %195 = vmatprep.mubr.f32.mxu0 %v1505_v0  ;;  %v1221_v39 = vpack.c.bf16 %v364_v37, %v362_v36  ;;  %v363_v41 = vld [vmem:[#allocation2 + $0xb0] sm:$0xff]  ;;  %v366_v42 = vld [vmem:[#allocation2 + $0xc8] sm:$0xff]  ;;  %v368_v43 = vld [vmem:[#allocation2 + $0xd8] sm:$0xff]  ;;  %v259_v30 = vunpack.c.0.s8 %v258_v23 }
  0x55   :  { %1208 = vmatpush1.bf16.msra.mxu1 %v1207_v20  ;;  %v1223_v44 = vpack.c.bf16 %v363_v41, %v361_v40  ;;  %v1225_v45 = vpack.c.bf16 %v368_v43, %v366_v42  ;;  %v365_v46 = vld [vmem:[#allocation2 + $0xc0] sm:$0xff]  ;;  %v367_v47 = vld [vmem:[#allocation2 + $0xd0] sm:$0xff]  ;;  %v370_v48 = vld [vmem:[#allocation2 + $0xe8] sm:$0xff]  ;;  %v1655_v40 = vsub.s32 0, %v261_v31 }
  0x56   :  { %1210 = vmatprep.subr.bf16.mxu1 %v1209_v21  ;;  %v372_v49 = vld [vmem:[#allocation2 + $0xf8] sm:$0xff]  ;;  %v1227_v50 = vpack.c.bf16 %v367_v47, %v365_v46  ;;  %v369_v52 = vld [vmem:[#allocation2 + $0xe0] sm:$0xff]  ;;  %v371_v53 = vld [vmem:[#allocation2 + $0xf0] sm:$0xff]  ;;  %v1651_v36 = vsub.s32 %v259_v30, %v261_v31 }
  0x57   :  { %1090 = vmatmul.mubr.msk.f32.gmra.mrb[4].mxu0 %vm101_vm1, %v96_v5  ;;  %v1229_v51 = vpack.c.bf16 %v372_v49, %v370_v48  ;;  %v1231_v54 = vpack.c.bf16 %v371_v53, %v369_v52  ;;  %v1092_v35 = vld [vmem:[%s1736_s2] ss:$0 sm:$0xff]  ;;  %v593_v31 = vld [vmem:[#allocation5 + $0x10] sm:$0xff] }
  0x58   :  { %201 = vmatprep.mubr.f32.mxu0 %v1505_v0 }
  0x59   :  { %1212 = vmatpush1.bf16.msra.mxu1 %v1211_v26 }
  0x5a   :  { %1214 = vmatprep.subr.bf16.mxu1 %v1213_v27 }
  0x5b   :  { %1091 = vmatmul.mubr.msk.f32.gmra.mrb[6].mxu0 %vm101_vm1, %v97_v6 }
  0x5c   :  { %687 = vmatprep.mubr.f32.mxu0 %v1505_v0 }
  0x5d   :  { %1216 = vmatpush1.bf16.msra.mxu1 %v1215_v32 }
  0x5e   :  { %1218 = vmatprep.subr.bf16.mxu1 %v1217_v33 }
  0x61   :  { %1220 = vmatpush1.bf16.msra.mxu1 %v1219_v38 }
  0x62   :  { %1222 = vmatprep.subr.bf16.mxu1 %v1221_v39 }
  0x65   :  { %1224 = vmatpush1.bf16.msra.mxu1 %v1223_v44 }
  0x66   :  { %1226 = vmatprep.subr.bf16.mxu1 %v1225_v45 }
  0x69   :  { %1228 = vmatpush1.bf16.msra.mxu1 %v1227_v50 }
  0x6a   :  { %1230 = vmatprep.subr.bf16.mxu1 %v1229_v51 }
  0x6d   :  { %1232 = vmatpush1.bf16.msra.mxu1 %v1231_v54 }
 0x122   :  { %v185_v55 = vpop.f32.mrb[0].mxu0 }
 0x123   :  { %v187_v56 = vpop.f32.mrb[1].mxu0 }
 0x124   :  { %v208_v57 = vrot.slane %v187_v56, 4 }
 0x126   :  { %v209_v58 = vadd.f32 %v208_v57, %v187_v56  ;;  %v191_v59 = vpop.f32.mrb[2].mxu0 }
 0x127   :  { %v193_v60 = vpop.f32.mrb[3].mxu0 }
 0x128   :  { %v210_v61 = vrot.slane %v209_v58, 2  ;;  %v214_v62 = vrot.slane %v193_v60, 4 }
 0x12a   :  { %v211_v63 = vadd.f32 %v210_v61, %v209_v58  ;;  %v215_v1 = vadd.f32 %v214_v62, %v193_v60  ;;  %v197_v2 = vpop.f32.mrb[4].mxu0 }
 0x12b   :  { %v199_v3 = vpop.f32.mrb[5].mxu0 }
 0x12c   :  { %v212_v4 = vrot.slane %v211_v63, 1  ;;  %v216_v5 = vrot.slane %v215_v1, 2  ;;  %v220_v6 = vrot.slane %v199_v3, 4 }
 0x12e   :  { %v217_v7 = vadd.f32 %v216_v5, %v215_v1  ;;  %v221_v8 = vadd.f32 %v220_v6, %v199_v3  ;;  %v203_v9 = vpop.f32.mrb[6].mxu0  ;;  %v213_v11 = vadd.f32 %v212_v4, %v211_v63 }
 0x12f   :  { %v205_v10 = vpop.f32.mrb[7].mxu0 }
 0x130   :  { %v218_v12 = vrot.slane %v217_v7, 1  ;;  %v222_v13 = vrot.slane %v221_v8, 2  ;;  %v226_v14 = vrot.slane %v205_v10, 4  ;;  %v233_v18 = vmul.f32 0.125, %v213_v11 }
 0x132   :  { %v219_v15 = vadd.f32 %v218_v12, %v217_v7  ;;  %v223_v16 = vadd.f32 %v222_v13, %v221_v8  ;;  %v227_v17 = vadd.f32 %v226_v14, %v205_v10 }
 0x134   :  { %v234_v19 = vmul.f32 0.125, %v219_v15  ;;  %v224_v20 = vrot.slane %v223_v16, 1  ;;  %v228_v21 = vrot.slane %v227_v17, 2 }
 0x136   :  { %v249_v25 = vsel %vm248_vm2, %v234_v19, %v233_v18  ;;  %v225_v26 = vadd.f32 %v224_v20, %v223_v16  ;;  %v229_v27 = vadd.f32 %v228_v21, %v227_v17 }
 0x138   :  { %v235_v28 = vmul.f32 0.125, %v225_v26  ;;  %v230_v29 = vrot.slane %v229_v27, 1 }
 0x13a   :  { %v251_v32 = vsel %vm250_vm3, %v235_v28, %v249_v25  ;;  %v231_v33 = vadd.f32 %v230_v29, %v229_v27  ;;  %v592_v27 = vld [vmem:[#allocation5 + $0x8] sm:$0xff]  ;;  %v594_v28 = vld [vmem:[#allocation5 + $0x18] sm:$0xff]  ;;  %v591_v29 = vld [vmem:[#allocation5] sm:$0xff] }
 0x13b   :  { %v1233_v30 = vpack.c.bf16 %v594_v28, %v592_v27 }
 0x13c   :  { %v236_v34 = vmul.f32 0.125, %v231_v33  ;;  %v598_v33 = vld [vmem:[#allocation5 + $0x38] sm:$0xff] }
 0x13d   :  { %1234 = vmatprep.subr.bf16.mxu0 %v1233_v30 }
 0x13e   :  { %v253_v37 = vsel %vm252_vm4, %v236_v34, %v251_v32  ;;  %v596_v32 = vld [vmem:[#allocation5 + $0x28] sm:$0xff]  ;;  %v1235_v34 = vpack.c.bf16 %v593_v31, %v591_v29 }
 0x13f   :  { %v255_v38 = vsub.f32 %v1092_v35, %v253_v37  ;;  %v1237_v35 = vpack.c.bf16 %v598_v33, %v596_v32  ;;  %v595_v37 = vld [vmem:[#allocation5 + $0x20] sm:$0xff] }
 0x140   :  { %1236 = vmatpush1.bf16.msra.mxu0 %v1235_v34 }
 0x141   :  { %v263_v39 = vrot.slane %v255_v38, %v1651_v36  ;;  %v597_v38 = vld [vmem:[#allocation5 + $0x30] sm:$0xff]  ;;  %1238 = vmatprep.subr.bf16.mxu0 %v1237_v35 }
 0x143   :  { %v271_v41 = vrot.slane %v263_v39, %v1651_v36  ;;  %v264_v42 = vcombine.high %v263_v39, %v263_v39  ;;  %v600_v39 = vld [vmem:[#allocation5 + $0x48] sm:$0xff] }
 0x145   :  { %v284_v43 = vrot.slane %v271_v41, %v1655_v40  ;;  %v278_v44 = vrot.slane %v264_v42, %v1651_v36  ;;  %v279_v45 = vcombine.high %v271_v41, %v271_v41  ;;  %v602_v41 = vld [vmem:[#allocation5 + $0x58] sm:$0xff]  ;;  %v1239_v42 = vpack.c.bf16 %v597_v38, %v595_v37 }
 0x147   :  { %v301_v46 = vadd.f32 %v284_v43, %v185_v55  ;;  %v288_v47 = vrot.slane %v278_v44, %v1655_v40  ;;  %v292_v48 = vrot.slane %v279_v45, %v1655_v40  ;;  %v280_v49 = vcombine.high %v278_v44, %v278_v44  ;;  %v599_v44 = vld [vmem:[#allocation5 + $0x40] sm:$0xff]  ;;  %v601_v45 = vld [vmem:[#allocation5 + $0x50] sm:$0xff]  ;;  %1240 = vmatpush1.bf16.msra.mxu0 %v1239_v42 }
 0x148   :  { %v1241_v43 = vpack.c.bf16 %v602_v41, %v600_v39 }
 0x149   :  { %v309_v50 = vand.u32 2147483647, %v301_v46  ;;  %v302_v51 = vadd.f32 %v288_v47, %v191_v59  ;;  %v303_v52 = vadd.f32 %v292_v48, %v197_v2  ;;  %v296_v53 = vrot.slane %v280_v49, %v1655_v40  ;;  %v606_v47 = vld [vmem:[#allocation5 + $0x78] sm:$0xff] }
 0x14a   :  { %v305_v12 = vmax.f32 %v301_v46, 0.0  ;;  %v604_v46 = vld [vmem:[#allocation5 + $0x68] sm:$0xff]  ;;  %v1243_v48 = vpack.c.bf16 %v601_v45, %v599_v44  ;;  %1242 = vmatprep.subr.bf16.mxu0 %v1241_v43 }
 0x14b   :  { %v313_v54 = vsub.f32 0.0, %v309_v50  ;;  %v310_v56 = vand.u32 2147483647, %v302_v51  ;;  %v311_v57 = vand.u32 2147483647, %v303_v52  ;;  %v304_v58 = vadd.f32 %v296_v53, %v203_v9  ;;  %v603_v50 = vld [vmem:[#allocation5 + $0x60] sm:$0xff] }
 0x14c   :  { %v306_v18 = vmax.f32 %v302_v51, 0.0  ;;  %v307_v22 = vmax.f32 %v303_v52, 0.0  ;;  %v1245_v49 = vpack.c.bf16 %v606_v47, %v604_v46  ;;  %v605_v51 = vld [vmem:[#allocation5 + $0x70] sm:$0xff]  ;;  %v608_v52 = vld [vmem:[#allocation5 + $0x88] sm:$0xff]  ;;  %v610_v53 = vld [vmem:[#allocation5 + $0x98] sm:$0xff]  ;;  %1244 = vmatpush1.bf16.msra.mxu0 %v1243_v48 }
 0x14d   :  { %v317_v60 = vmul.f32 1.442695, %v313_v54  ;;  %v314_v61 = vsub.f32 0.0, %v310_v56  ;;  %v315_v62 = vsub.f32 0.0, %v311_v57  ;;  %v312_v63 = vand.u32 2147483647, %v304_v58 }
 0x14e   :  { %v308_v25 = vmax.f32 %v304_v58, 0.0  ;;  %v1247_v54 = vpack.c.bf16 %v605_v51, %v603_v50  ;;  %1246 = vmatprep.subr.bf16.mxu0 %v1245_v49  ;;  %v1249_v56 = vpack.c.bf16 %v610_v53, %v608_v52  ;;  %v607_v57 = vld [vmem:[#allocation5 + $0x80] sm:$0xff]  ;;  %v609_v58 = vld [vmem:[#allocation5 + $0x90] sm:$0xff] }
 0x14f   :  { %1327 = vpow2.f32 %v317_v60  ;;  %v319_v55 = vmul.f32 1.442695, %v314_v61  ;;  %v321_v1 = vmul.f32 1.442695, %v315_v62  ;;  %v316_v3 = vsub.f32 0.0, %v312_v63  ;;  %v612_v60 = vld [vmem:[#allocation5 + $0xa8] sm:$0xff] }
 0x150   :  { %v614_v61 = vld [vmem:[#allocation5 + $0xb8] sm:$0xff]  ;;  %1248 = vmatpush1.bf16.msra.mxu0 %v1247_v54  ;;  %v1251_v62 = vpack.c.bf16 %v609_v58, %v607_v57  ;;  %v1093_v54 = vld [vmem:[%s1738_s4] ss:$0 sm:$0xff] }
 0x151   :  { %1329 = vpow2.f32 %v319_v55  ;;  %v323_v4 = vmul.f32 1.442695, %v316_v3  ;;  %1250 = vmatprep.subr.bf16.mxu0 %v1249_v56  ;;  %v1253_v63 = vpack.c.bf16 %v614_v61, %v612_v60  ;;  %v611_v55 = vld [vmem:[#allocation5 + $0xa0] sm:$0xff]  ;;  %v616_v3 = vld [vmem:[#allocation5 + $0xc8] sm:$0xff] }
 0x152   :  { %1331 = vpow2.f32 %v321_v1  ;;  %v613_v1 = vld [vmem:[#allocation5 + $0xb0] sm:$0xff] }
 0x153   :  { %1333 = vpow2.f32 %v323_v4  ;;  %v618_v4 = vld [vmem:[#allocation5 + $0xd8] sm:$0xff] }
 0x154   :  { %1252 = vmatpush1.bf16.msra.mxu0 %v1251_v62 }
 0x155   :  { %1254 = vmatprep.subr.bf16.mxu0 %v1253_v63 }
 0x159   :  { %v1328_v59 = vpop.eup %1327 }
 0x15a   :  { %v325_v2 = vadd.f32 1.0, %v1328_v59  ;;  %v1255_v59 = vpack.c.bf16 %v613_v1, %v611_v55 }
 0x15b   :  { %v1330_v5 = vpop.eup %1329 }
 0x15c   :  { %v1332_v6 = vpop.eup %1331  ;;  %1335 = vlog2.f32 %v325_v2  ;;  %v326_v7 = vadd.f32 1.0, %v1330_v5  ;;  %v1257_v2 = vpack.c.bf16 %v618_v4, %v616_v3  ;;  %v615_v5 = vld [vmem:[#allocation5 + $0xc0] sm:$0xff]  ;;  %1256 = vmatpush1.bf16.msra.mxu0 %v1255_v59 }
 0x15d   :  { %v327_v8 = vadd.f32 1.0, %v1332_v6  ;;  %v1334_v9 = vpop.eup %1333  ;;  %v617_v6 = vld [vmem:[#allocation5 + $0xd0] sm:$0xff] }
 0x15e   :  { %1337 = vlog2.f32 %v326_v7  ;;  %v328_v10 = vadd.f32 1.0, %v1334_v9  ;;  %v620_v7 = vld [vmem:[#allocation5 + $0xe8] sm:$0xff]  ;;  %v1259_v9 = vpack.c.bf16 %v617_v6, %v615_v5  ;;  %1258 = vmatprep.subr.bf16.mxu0 %v1257_v2 }
 0x15f   :  { %1339 = vlog2.f32 %v327_v8  ;;  %v622_v8 = vld [vmem:[#allocation5 + $0xf8] sm:$0xff] }
 0x160   :  { %1341 = vlog2.f32 %v328_v10  ;;  %v1261_v10 = vpack.c.bf16 %v622_v8, %v620_v7  ;;  %1260 = vmatpush1.bf16.msra.mxu0 %v1259_v9 }
 0x162   :  { %1262 = vmatprep.subr.bf16.mxu0 %v1261_v10 }
 0x166   :  { %v1336_v11 = vpop.eup %1335 }
 0x167   :  { %v330_v13 = vmul.f32 0.6931472, %v1336_v11  ;;  %v619_v11 = vld [vmem:[#allocation5 + $0xe0] sm:$0xff] }
 0x168   :  { %v1338_v14 = vpop.eup %1337 }
 0x169   :  { %v337_v15 = vadd.f32 %v330_v13, %v305_v12  ;;  %v332_v16 = vmul.f32 0.6931472, %v1338_v14  ;;  %v1340_v17 = vpop.eup %1339  ;;  %v621_v12 = vld [vmem:[#allocation5 + $0xf0] sm:$0xff] }
 0x16a   :  { %v334_v20 = vmul.f32 0.6931472, %v1340_v17  ;;  %v1342_v21 = vpop.eup %1341  ;;  %v1263_v13 = vpack.c.bf16 %v621_v12, %v619_v11 }
 0x16b   :  { %438 = vmatmul.mubr.f32.vlgmr.msra.gmra.mrb[0].mxu1 %v337_v15  ;;  %v338_v19 = vadd.f32 %v332_v16, %v306_v18  ;;  %v336_v24 = vmul.f32 0.6931472, %v1342_v21 }
 0x16c   :  { %443 = vmatprep.mubr.f32.mxu1 %v1505_v0  ;;  %v339_v23 = vadd.f32 %v334_v20, %v307_v22  ;;  %1264 = vmatpush1.bf16.msra.mxu0 %v1263_v13 }
 0x16d   :  { %v340_v26 = vadd.f32 %v336_v24, %v308_v25 }
 0x16f   :  { %444 = vmatmul.mubr.f32.gmra.mrb[2].mxu1 %v338_v19 }
 0x170   :  { %449 = vmatprep.mubr.f32.mxu1 %v1505_v0 }
 0x173   :  { %450 = vmatmul.mubr.f32.gmra.mrb[4].mxu1 %v339_v23 }
 0x174   :  { %455 = vmatprep.mubr.f32.mxu1 %v1505_v0 }
 0x177   :  { %456 = vmatmul.mubr.f32.gmra.mrb[6].mxu1 %v340_v26 }
 0x178   :  { %1163 = vmatprep.mubr.msk.f32.mxu1 %vm1508_vm5, %v1505_v0 }
 0x23e   :  { %v439_v14 = vpop.f32.mrb[0].mxu1 }
 0x23f   :  { %v441_v15 = vpop.f32.mrb[1].mxu1 }
 0x240   :  { %v462_v16 = vrot.slane %v441_v15, 4 }
 0x242   :  { %v463_v17 = vadd.f32 %v462_v16, %v441_v15  ;;  %v445_v18 = vpop.f32.mrb[2].mxu1 }
 0x243   :  { %v447_v19 = vpop.f32.mrb[3].mxu1 }
 0x244   :  { %v464_v20 = vrot.slane %v463_v17, 2  ;;  %v468_v21 = vrot.slane %v447_v19, 4 }
 0x246   :  { %v465_v22 = vadd.f32 %v464_v20, %v463_v17  ;;  %v469_v23 = vadd.f32 %v468_v21, %v447_v19  ;;  %v451_v24 = vpop.f32.mrb[4].mxu1 }
 0x247   :  { %v453_v25 = vpop.f32.mrb[5].mxu1 }
 0x248   :  { %v466_v26 = vrot.slane %v465_v22, 1  ;;  %v470_v27 = vrot.slane %v469_v23, 2  ;;  %v474_v28 = vrot.slane %v453_v25, 4 }
 0x24a   :  { %v471_v29 = vadd.f32 %v470_v27, %v469_v23  ;;  %v475_v30 = vadd.f32 %v474_v28, %v453_v25  ;;  %v457_v31 = vpop.f32.mrb[6].mxu1  ;;  %v467_v33 = vadd.f32 %v466_v26, %v465_v22 }
 0x24b   :  { %v459_v32 = vpop.f32.mrb[7].mxu1 }
 0x24c   :  { %v472_v34 = vrot.slane %v471_v29, 1  ;;  %v476_v35 = vrot.slane %v475_v30, 2  ;;  %v480_v37 = vrot.slane %v459_v32, 4  ;;  %v486_v42 = vmul.f32 0.125, %v467_v33 }
 0x24e   :  { %v473_v38 = vadd.f32 %v472_v34, %v471_v29  ;;  %v477_v39 = vadd.f32 %v476_v35, %v475_v30  ;;  %v481_v41 = vadd.f32 %v480_v37, %v459_v32 }
 0x250   :  { %v487_v43 = vmul.f32 0.125, %v473_v38  ;;  %v478_v44 = vrot.slane %v477_v39, 1  ;;  %v482_v45 = vrot.slane %v481_v41, 2 }
 0x252   :  { %v501_v46 = vsel %vm248_vm2, %v487_v43, %v486_v42  ;;  %v479_v47 = vadd.f32 %v478_v44, %v477_v39  ;;  %v483_v48 = vadd.f32 %v482_v45, %v481_v41 }
 0x254   :  { %v488_v49 = vmul.f32 0.125, %v479_v47  ;;  %v484_v50 = vrot.slane %v483_v48, 1  ;;  %v866_v47 = vld [vmem:[#allocation7 + $0x8] sm:$0xff] }
 0x256   :  { %v502_v51 = vsel %vm250_vm3, %v488_v49, %v501_v46  ;;  %v485_v52 = vadd.f32 %v484_v50, %v483_v48  ;;  %v865_v46 = vld [vmem:[#allocation7] sm:$0xff]  ;;  %v867_v48 = vld [vmem:[#allocation7 + $0x10] sm:$0xff]  ;;  %v1507_v49 = vmov 0.0|0.0  }
 0x257   :  { %1265 = vmatprep.subr.bf16.mxu1 %v1507_v49  ;;  %v1266_v50 = vpack.c.bf16 %v866_v47, %v865_v46  ;;  %1289 = vmatprep.subr.bf16.mxu0 %v1507_v49  ;;  %v1094_v47 = vld [vmem:[%s1740_s6] ss:$0 sm:$0xff] }
 0x258   :  { %v489_v53 = vmul.f32 0.125, %v485_v52 }
 0x259   :  { %1267 = vmatpush3.bf16.msra.mxu1 %v1266_v50 }
 0x25a   :  { %v503_v56 = vsel %vm252_vm4, %v489_v53, %v502_v51  ;;  %v868_v51 = vld [vmem:[#allocation7 + $0x18] sm:$0xff]  ;;  %1268 = vmatprep.subr.bf16.mxu1 %v1507_v49  ;;  %v869_v53 = vld [vmem:[#allocation7 + $0x20] sm:$0xff] }
 0x25b   :  { %v505_v57 = vsub.f32 %v1093_v54, %v503_v56  ;;  %v1269_v52 = vpack.c.bf16 %v868_v51, %v867_v48  ;;  %v870_v54 = vld [vmem:[#allocation7 + $0x28] sm:$0xff] }
 0x25c   :  { %v1272_v56 = vpack.c.bf16 %v870_v54, %v869_v53 }
 0x25d   :  { %v513_v58 = vrot.slane %v505_v57, %v1651_v36  ;;  %1270 = vmatpush3.bf16.msra.mxu1 %v1269_v52  ;;  %v871_v57 = vld [vmem:[#allocation7 + $0x30] sm:$0xff] }
 0x25e   :  { %1271 = vmatprep.subr.bf16.mxu1 %v1507_v49 }
 0x25f   :  { %v521_v60 = vrot.slane %v513_v58, %v1651_v36  ;;  %v514_v61 = vcombine.high %v513_v58, %v513_v58  ;;  %v872_v58 = vld [vmem:[#allocation7 + $0x38] sm:$0xff] }
 0x261   :  { %v534_v62 = vrot.slane %v521_v60, %v1655_v40  ;;  %v528_v63 = vrot.slane %v514_v61, %v1651_v36  ;;  %v529_v55 = vcombine.high %v521_v60, %v521_v60  ;;  %1273 = vmatpush3.bf16.msra.mxu1 %v1272_v56  ;;  %v1275_v60 = vpack.c.bf16 %v872_v58, %v871_v57  ;;  %v873_v61 = vld [vmem:[#allocation7 + $0x40] sm:$0xff] }
 0x262   :  { %1274 = vmatprep.subr.bf16.mxu1 %v1507_v49 }
 0x263   :  { %v551_v1 = vadd.f32 %v534_v62, %v439_v14  ;;  %v538_v3 = vrot.slane %v528_v63, %v1655_v40  ;;  %v542_v4 = vrot.slane %v529_v55, %v1655_v40  ;;  %v530_v59 = vcombine.high %v528_v63, %v528_v63  ;;  %v874_v62 = vld [vmem:[#allocation7 + $0x48] sm:$0xff]  ;;  %v875_v63 = vld [vmem:[#allocation7 + $0x50] sm:$0xff]  ;;  %v876_v55 = vld [vmem:[#allocation7 + $0x58] sm:$0xff] }
 0x265   :  { %v559_v2 = vand.u32 2147483647, %v551_v1  ;;  %v552_v5 = vadd.f32 %v538_v3, %v445_v18  ;;  %v553_v6 = vadd.f32 %v542_v4, %v451_v24  ;;  %v546_v7 = vrot.slane %v530_v59, %v1655_v40  ;;  %1276 = vmatpush3.bf16.msra.mxu1 %v1275_v60  ;;  %v877_v3 = vld [vmem:[#allocation7 + $0x60] sm:$0xff]  ;;  %v878_v4 = vld [vmem:[#allocation7 + $0x68] sm:$0xff] }
 0x266   :  { %v555_v29 = vmax.f32 %v551_v1, 0.0  ;;  %1277 = vmatprep.subr.bf16.mxu1 %v1507_v49  ;;  %v1281_v1 = vpack.c.bf16 %v876_v55, %v875_v63  ;;  %v1284_v59 = vpack.c.bf16 %v878_v4, %v877_v3 }
 0x267   :  { %v563_v8 = vsub.f32 0.0, %v559_v2  ;;  %v560_v9 = vand.u32 2147483647, %v552_v5  ;;  %v561_v10 = vand.u32 2147483647, %v553_v6  ;;  %v554_v11 = vadd.f32 %v546_v7, %v457_v31  ;;  %v879_v2 = vld [vmem:[#allocation7 + $0x70] sm:$0xff] }
 0x268   :  { %v556_v35 = vmax.f32 %v552_v5, 0.0  ;;  %v557_v41 = vmax.f32 %v553_v6, 0.0  ;;  %v880_v5 = vld [vmem:[#allocation7 + $0x78] sm:$0xff] }
 0x269   :  { %v567_v12 = vmul.f32 1.442695, %v563_v8  ;;  %v564_v13 = vsub.f32 0.0, %v560_v9  ;;  %v565_v15 = vsub.f32 0.0, %v561_v10  ;;  %v562_v16 = vand.u32 2147483647, %v554_v11 }
 0x26a   :  { %v558_v44 = vmax.f32 %v554_v11, 0.0  ;;  %v1287_v6 = vpack.c.bf16 %v880_v5, %v879_v2 }
 0x26b   :  { %1343 = vpow2.f32 %v567_v12  ;;  %v569_v14 = vmul.f32 1.442695, %v564_v13  ;;  %v571_v17 = vmul.f32 1.442695, %v565_v15  ;;  %v566_v19 = vsub.f32 0.0, %v562_v16 }
 0x26d   :  { %1345 = vpow2.f32 %v569_v14  ;;  %v573_v20 = vmul.f32 1.442695, %v566_v19 }
 0x26e   :  { %1347 = vpow2.f32 %v571_v17 }
 0x26f   :  { %1349 = vpow2.f32 %v573_v20 }
 0x275   :  { %v1344_v18 = vpop.eup %1343 }
 0x276   :  { %v575_v21 = vadd.f32 1.0, %v1344_v18 }
 0x277   :  { %v1346_v22 = vpop.eup %1345 }
 0x278   :  { %v1348_v23 = vpop.eup %1347  ;;  %1351 = vlog2.f32 %v575_v21  ;;  %v576_v24 = vadd.f32 1.0, %v1346_v22 }
 0x279   :  { %v577_v25 = vadd.f32 1.0, %v1348_v23  ;;  %v1350_v26 = vpop.eup %1349 }
 0x27a   :  { %1353 = vlog2.f32 %v576_v24  ;;  %v578_v27 = vadd.f32 1.0, %v1350_v26 }
 0x27b   :  { %1355 = vlog2.f32 %v577_v25 }
 0x27c   :  { %1357 = vlog2.f32 %v578_v27 }
 0x282   :  { %v1352_v28 = vpop.eup %1351 }
 0x283   :  { %v580_v30 = vmul.f32 0.6931472, %v1352_v28 }
 0x284   :  { %v1354_v31 = vpop.eup %1353 }
 0x285   :  { %v587_v32 = vadd.f32 %v580_v30, %v555_v29  ;;  %v582_v33 = vmul.f32 0.6931472, %v1354_v31  ;;  %v1356_v34 = vpop.eup %1355 }
 0x286   :  { %v584_v38 = vmul.f32 0.6931472, %v1356_v34  ;;  %v1358_v39 = vpop.eup %1357 }
 0x287   :  { %688 = vmatmul.mubr.f32.vlgmr.msra.gmra.mrb[8].mxu0 %v587_v32  ;;  %v588_v37 = vadd.f32 %v582_v33, %v556_v35  ;;  %v586_v43 = vmul.f32 0.6931472, %v1358_v39 }
 0x288   :  { %693 = vmatprep.mubr.f32.mxu0 %v1505_v0  ;;  %v589_v42 = vadd.f32 %v584_v38, %v557_v41 }
 0x289   :  { %v590_v45 = vadd.f32 %v586_v43, %v558_v44 }
 0x28b   :  { %694 = vmatmul.mubr.f32.gmra.mrb[10].mxu0 %v588_v37 }
 0x28c   :  { %699 = vmatprep.mubr.f32.mxu0 %v1505_v0 }
 0x28f   :  { %700 = vmatmul.mubr.f32.gmra.mrb[12].mxu0 %v589_v42 }
 0x290   :  { %705 = vmatprep.mubr.f32.mxu0 %v1505_v0 }
 0x293   :  { %706 = vmatmul.mubr.f32.gmra.mrb[14].mxu0 %v590_v45 }
 0x294   :  { %1198 = vmatprep.mubr.msk.f32.mxu0 %vm1508_vm5, %v1505_v0  ;;  %v1278_v0 = vpack.c.bf16 %v874_v62, %v873_v61 }
 0x296   :  { %1279 = vmatpush3.bf16.msra.mxu1 %v1278_v0 }
 0x297   :  { %1280 = vmatprep.subr.bf16.mxu1 %v1507_v49 }
 0x29a   :  { %1282 = vmatpush3.bf16.msra.mxu1 %v1281_v1 }
 0x29b   :  { %1283 = vmatprep.subr.bf16.mxu1 %v1507_v49 }
 0x29e   :  { %1285 = vmatpush3.bf16.msra.mxu1 %v1284_v59 }
 0x29f   :  { %1286 = vmatprep.subr.bf16.mxu1 %v1507_v49 }
 0x2a2   :  { %1288 = vmatpush3.bf16.msra.mxu1 %v1287_v6 }
 0x35a   :  { %v689_v7 = vpop.f32.mrb[8].mxu0 }
 0x35b   :  { %v691_v8 = vpop.f32.mrb[9].mxu0 }
 0x35c   :  { %v712_v9 = vrot.slane %v691_v8, 4 }
 0x35e   :  { %v713_v10 = vadd.f32 %v712_v9, %v691_v8  ;;  %v695_v11 = vpop.f32.mrb[10].mxu0 }
 0x35f   :  { %v697_v12 = vpop.f32.mrb[11].mxu0 }
 0x360   :  { %v714_v13 = vrot.slane %v713_v10, 2  ;;  %v718_v15 = vrot.slane %v697_v12, 4 }
 0x362   :  { %v715_v16 = vadd.f32 %v714_v13, %v713_v10  ;;  %v719_v14 = vadd.f32 %v718_v15, %v697_v12  ;;  %v701_v17 = vpop.f32.mrb[12].mxu0 }
 0x363   :  { %v703_v19 = vpop.f32.mrb[13].mxu0 }
 0x364   :  { %v716_v20 = vrot.slane %v715_v16, 1  ;;  %v720_v18 = vrot.slane %v719_v14, 2  ;;  %v724_v21 = vrot.slane %v703_v19, 4 }
 0x366   :  { %v721_v22 = vadd.f32 %v720_v18, %v719_v14  ;;  %v725_v23 = vadd.f32 %v724_v21, %v703_v19  ;;  %v707_v24 = vpop.f32.mrb[14].mxu0  ;;  %v717_v26 = vadd.f32 %v716_v20, %v715_v16 }
 0x367   :  { %v709_v25 = vpop.f32.mrb[15].mxu0 }
 0x368   :  { %v722_v27 = vrot.slane %v721_v22, 1  ;;  %v726_v28 = vrot.slane %v725_v23, 2  ;;  %v730_v29 = vrot.slane %v709_v25, 4  ;;  %v736_v33 = vmul.f32 0.125, %v717_v26 }
 0x36a   :  { %v723_v30 = vadd.f32 %v722_v27, %v721_v22  ;;  %v727_v31 = vadd.f32 %v726_v28, %v725_v23  ;;  %v731_v32 = vadd.f32 %v730_v29, %v709_v25 }
 0x36c   :  { %v737_v34 = vmul.f32 0.125, %v723_v30  ;;  %v728_v35 = vrot.slane %v727_v31, 1  ;;  %v732_v37 = vrot.slane %v731_v32, 2 }
 0x36e   :  { %v751_v38 = vsel %vm248_vm2, %v737_v34, %v736_v33  ;;  %v729_v39 = vadd.f32 %v728_v35, %v727_v31  ;;  %v733_v41 = vadd.f32 %v732_v37, %v731_v32 }
 0x370   :  { %v738_v42 = vmul.f32 0.125, %v729_v39  ;;  %v734_v43 = vrot.slane %v733_v41, 1 }
 0x372   :  { %v752_v44 = vsel %vm250_vm3, %v738_v42, %v751_v38  ;;  %v735_v45 = vadd.f32 %v734_v43, %v733_v41 }
 0x374   :  { %v739_v46 = vmul.f32 0.125, %v735_v45 }
 0x376   :  { %v753_v48 = vsel %vm252_vm4, %v739_v46, %v752_v44 }
 0x377   :  { %v755_v50 = vsub.f32 %v1094_v47, %v753_v48 }
 0x379   :  { %v763_v51 = vrot.slane %v755_v50, %v1651_v36 }
 0x37b   :  { %v764_v52 = vcombine.high %v763_v51, %v763_v51  ;;  %v771_v53 = vrot.slane %v763_v51, %v1651_v36 }
 0x37d   :  { %v778_v54 = vrot.slane %v764_v52, %v1651_v36  ;;  %v779_v56 = vcombine.high %v771_v53, %v771_v53  ;;  %v784_v57 = vrot.slane %v771_v53, %v1655_v40 }
 0x37f   :  { %v780_v58 = vcombine.high %v778_v54, %v778_v54  ;;  %v788_v60 = vrot.slane %v778_v54, %v1655_v40  ;;  %v792_v61 = vrot.slane %v779_v56, %v1655_v40  ;;  %v801_v62 = vadd.f32 %v784_v57, %v689_v7 }
 0x381   :  { %v796_v0 = vrot.slane %v780_v58, %v1655_v40  ;;  %v802_v63 = vadd.f32 %v788_v60, %v695_v11  ;;  %v803_v55 = vadd.f32 %v792_v61, %v701_v17  ;;  %v809_v1 = vand.u32 2147483647, %v801_v62 }
 0x382   :  { %v805_v21 = vmax.f32 %v801_v62, 0.0 }
 0x383   :  { %v810_v3 = vand.u32 2147483647, %v802_v63  ;;  %v811_v4 = vand.u32 2147483647, %v803_v55  ;;  %v804_v59 = vadd.f32 %v796_v0, %v707_v24  ;;  %v813_v2 = vsub.f32 0.0, %v809_v1 }
 0x384   :  { %v806_v24 = vmax.f32 %v802_v63, 0.0  ;;  %v807_v27 = vmax.f32 %v803_v55, 0.0 }
 0x385   :  { %v814_v5 = vsub.f32 0.0, %v810_v3  ;;  %v815_v36 = vsub.f32 0.0, %v811_v4  ;;  %v812_v6 = vand.u32 2147483647, %v804_v59  ;;  %v817_v8 = vmul.f32 1.442695, %v813_v2 }
 0x386   :  { %v808_v30 = vmax.f32 %v804_v59, 0.0  ;;  %v975_v3 = vld [vmem:[#allocation8] sm:$0xff]  ;;  %v976_v4 = vld [vmem:[#allocation8 + $0x8] sm:$0xff]  ;;  %v977_v2 = vld [vmem:[#allocation8 + $0x10] sm:$0xff] }
 0x387   :  { %v819_v9 = vmul.f32 1.442695, %v814_v5  ;;  %v821_v10 = vmul.f32 1.442695, %v815_v36  ;;  %v816_v12 = vsub.f32 0.0, %v812_v6  ;;  %1359 = vpow2.f32 %v817_v8  ;;  %v978_v5 = vld [vmem:[#allocation8 + $0x18] sm:$0xff] }
 0x388   :  { %v1290_v59 = vpack.c.bf16 %v976_v4, %v975_v3  ;;  %v1293_v36 = vpack.c.bf16 %v978_v5, %v977_v2  ;;  %v979_v6 = vld [vmem:[#allocation8 + $0x20] sm:$0xff]  ;;  %v980_v8 = vld [vmem:[#allocation8 + $0x28] sm:$0xff] }
 0x389   :  { %1361 = vpow2.f32 %v819_v9  ;;  %v823_v13 = vmul.f32 1.442695, %v816_v12  ;;  %v1296_v9 = vpack.c.bf16 %v980_v8, %v979_v6  ;;  %v982_v12 = vld [vmem:[#allocation8 + $0x38] sm:$0xff] }
 0x38a   :  { %1363 = vpow2.f32 %v821_v10  ;;  %1291 = vmatpush3.bf16.msra.mxu0 %v1290_v59  ;;  %v981_v10 = vld [vmem:[#allocation8 + $0x30] sm:$0xff] }
 0x38b   :  { %1365 = vpow2.f32 %v823_v13  ;;  %1292 = vmatprep.subr.bf16.mxu0 %v1507_v49  ;;  %v1299_v13 = vpack.c.bf16 %v982_v12, %v981_v10 }
 0x38e   :  { %1294 = vmatpush3.bf16.msra.mxu0 %v1293_v36 }
 0x38f   :  { %1295 = vmatprep.subr.bf16.mxu0 %v1507_v49 }
 0x391   :  { %v1360_v40 = vpop.eup %1359 }
 0x392   :  { %v825_v11 = vadd.f32 1.0, %v1360_v40  ;;  %1297 = vmatpush3.bf16.msra.mxu0 %v1296_v9  ;;  %v983_v40 = vld [vmem:[#allocation8 + $0x40] sm:$0xff] }
 0x393   :  { %v1362_v7 = vpop.eup %1361  ;;  %1298 = vmatprep.subr.bf16.mxu0 %v1507_v49 }
 0x394   :  { %v1364_v15 = vpop.eup %1363  ;;  %v826_v16 = vadd.f32 1.0, %v1362_v7  ;;  %1367 = vlog2.f32 %v825_v11  ;;  %v984_v7 = vld [vmem:[#allocation8 + $0x48] sm:$0xff] }
 0x395   :  { %v1366_v14 = vpop.eup %1365  ;;  %v827_v17 = vadd.f32 1.0, %v1364_v15  ;;  %v1302_v11 = vpack.c.bf16 %v984_v7, %v983_v40  ;;  %v985_v15 = vld [vmem:[#allocation8 + $0x50] sm:$0xff] }
 0x396   :  { %v828_v19 = vadd.f32 1.0, %v1366_v14  ;;  %1369 = vlog2.f32 %v826_v16  ;;  %1300 = vmatpush3.bf16.msra.mxu0 %v1299_v13  ;;  %v986_v16 = vld [vmem:[#allocation8 + $0x58] sm:$0xff] }
 0x397   :  { %1371 = vlog2.f32 %v827_v17  ;;  %1301 = vmatprep.subr.bf16.mxu0 %v1507_v49  ;;  %v1305_v14 = vpack.c.bf16 %v986_v16, %v985_v15  ;;  %v987_v17 = vld [vmem:[#allocation8 + $0x60] sm:$0xff] }
 0x398   :  { %1373 = vlog2.f32 %v828_v19  ;;  %v988_v19 = vld [vmem:[#allocation8 + $0x68] sm:$0xff] }
 0x39a   :  { %1303 = vmatpush3.bf16.msra.mxu0 %v1302_v11 }
 0x39b   :  { %1304 = vmatprep.subr.bf16.mxu0 %v1507_v49 }
 0x39e   :  { %v1368_v20 = vpop.eup %1367  ;;  %1306 = vmatpush3.bf16.msra.mxu0 %v1305_v14 }
 0x39f   :  { %v830_v22 = vmul.f32 0.6931472, %v1368_v20  ;;  %1307 = vmatprep.subr.bf16.mxu0 %v1507_v49  ;;  %v1308_v20 = vpack.c.bf16 %v988_v19, %v987_v17 }
 0x3a0   :  { %v1370_v18 = vpop.eup %1369 }
 0x3a1   :  { %v1372_v23 = vpop.eup %1371  ;;  %v832_v25 = vmul.f32 0.6931472, %v1370_v18  ;;  %v837_v29 = vadd.f32 %v830_v22, %v805_v21  ;;  %v989_v18 = vld [vmem:[#allocation8 + $0x70] sm:$0xff]  ;;  %v990_v21 = vld [vmem:[#allocation8 + $0x78] sm:$0xff] }
 0x3a2   :  { %v1374_v26 = vpop.eup %1373  ;;  %v834_v28 = vmul.f32 0.6931472, %v1372_v23  ;;  %1309 = vmatpush3.bf16.msra.mxu0 %v1308_v20  ;;  %v1311_v22 = vpack.c.bf16 %v990_v21, %v989_v18  ;;  %v1095_v23 = vld [vmem:[%s1742_s8] ss:$0 sm:$0xff]  ;;  %s1509_s8 = smov [#allocation10]  }
 0x3a3   :  { %v836_v31 = vmul.f32 0.6931472, %v1374_v26  ;;  %v838_v32 = vadd.f32 %v832_v25, %v806_v24  ;;  %v841_v34 = vrot.slane %v837_v29, 4  ;;  %1310 = vmatprep.subr.bf16.mxu0 %v1507_v49  ;;  %s1075_s23 = sshll.u32 %s1509_s8, 4  ;;  %s1076_s23 = int_to_ptr.vmem [resolvable:$true] %s1075_s23 }
 0x3a4   :  { %v839_v33 = vadd.f32 %v834_v28, %v807_v27  ;;  %s1467_s5 = scalar_lea.vmem %s1076_s23, 64  ;;  %p1472_p5 = scmp.lt.s32.totalorder %s1076_s23, %s1076_s23 }
 0x3a5   :  { %v840_v35 = vadd.f32 %v836_v31, %v808_v30  ;;  %v847_v37 = vrot.slane %v838_v32, 4  ;;  %v842_v38 = vmax.f32 %v837_v29, %v841_v34  ;;  %p1468_p4 = scmp.ne.s32.totalorder %s1076_s23, %s1467_s5  ;;  %p1473_p6 = scmp.lt.s32.totalorder %s1467_s5, %s1467_s5 }
 0x3a6   :  { %v853_v39 = vrot.slane %v839_v33, 4  ;;  %1312 = vmatpush3.bf16.msra.mxu0 %v1311_v22 }
 0x3a7   :  { %v848_v41 = vmax.f32 %v838_v32, %v847_v37  ;;  %v859_v42 = vrot.slane %v840_v35, 4  ;;  %v843_v43 = vrot.slane %v842_v38, 2  ;;  %p1474_p7 = por %p1473_p6, %p1472_p5 }
 0x3a8   :  { %v854_v44 = vmax.f32 %v839_v33, %v853_v39 }
 0x3a9   :  { %v849_v45 = vrot.slane %v848_v41, 2  ;;  %v860_v46 = vmax.f32 %v840_v35, %v859_v42  ;;  %v844_v47 = vmax.f32 %v842_v38, %v843_v43  ;;  %v1096_v35 = vld [vmem:[%s1744_s10] ss:$0 sm:$0xff]  ;;  %p1475_p8 = pnand %p1474_p7, %p1468_p4 }
 0x3aa   :  { %v855_v48 = vrot.slane %v854_v44, 2 }
 0x3ab   :  { %v850_v50 = vmax.f32 %v848_v41, %v849_v45  ;;  %v861_v51 = vrot.slane %v860_v46, 2  ;;  %v845_v52 = vrot.slane %v844_v47, 1 }
 0x3ac   :  { %v856_v53 = vmax.f32 %v854_v44, %v855_v48 }
 0x3ad   :  { %v851_v54 = vrot.slane %v850_v50, 1  ;;  %v862_v56 = vmax.f32 %v860_v46, %v861_v51  ;;  %v846_v58 = vmax.f32 %v844_v47, %v845_v52 }
 0x3ae   :  { %v857_v57 = vrot.slane %v856_v53, 1 }
 0x3af   :  { %v852_v60 = vmax.f32 %v850_v50, %v851_v54  ;;  %v863_v61 = vrot.slane %v862_v56, 1 }
 0x3b0   :  { %v858_v62 = vmax.f32 %v856_v53, %v857_v57 }
 0x3b1   :  { %v864_v0 = vmax.f32 %v862_v56, %v863_v61  ;;  %v892_v63 = vsel %vm248_vm2, %v852_v60, %v846_v58 }
 0x3b2   :  { %v893_v55 = vsel %vm250_vm3, %v858_v62, %v892_v63 }
 0x3b3   :  { %v894_v1 = vsel %vm252_vm4, %v864_v0, %v893_v55 }
 0x3b4   :  { %1164 = vmatmul.mubr.f32.vlgmr.msra.gmra.mrb[8].mxu1 %v894_v1 }
 0x487   :  { %v962_v24 = vpop.f32.mrb[8].mxu1 }
 0x488   :  { %v963_v25 = vadd.f32 %v1095_v23, %v962_v24  ;;  %v1165_v26 = vpop.f32.mrb[9].mxu1 }
 0x48a   :  { %v967_v27 = vand.u32 2147483647, %v963_v25  ;;  %v966_v49 = vmax.f32 %v963_v25, 0.0 }
 0x48c   :  { %v968_v28 = vsub.f32 0.0, %v967_v27 }
 0x48e   :  { %v969_v29 = vmul.f32 1.442695, %v968_v28 }
 0x490   :  { %1375 = vpow2.f32 %v969_v29 }
 0x49a   :  { %v1376_v30 = vpop.eup %1375 }
 0x49b   :  { %v971_v31 = vadd.f32 1.0, %v1376_v30 }
 0x49d   :  { %1377 = vlog2.f32 %v971_v31 }
 0x4a7   :  { %v1378_v32 = vpop.eup %1377 }
 0x4a8   :  { %v973_v33 = vmul.f32 0.6931472, %v1378_v32 }
 0x4aa   :  { %v974_v34 = vadd.f32 %v973_v33, %v966_v49 }
 0x4ac   :  { %1199 = vmatmul.mubr.f32.vlgmr.msra.gmra.mrb[16].mxu0 %v974_v34 }
 0x57f   :  { %v1064_v37 = vpop.f32.mrb[16].mxu0 }
 0x580   :  { %v1065_v38 = vadd.f32 %v1096_v35, %v1064_v37  ;;  %v1200_v39 = vpop.f32.mrb[17].mxu0 }
 0x582   :  { %1068 = vst [vmem:[#allocation10] sm:$0xf] %v1065_v38 }
 0x583   :  { %1478 = shalt.err (!%p1475_p8)
}
 0x584   :  { %s1479_s26 = scalar_lea.hbm %s1745_s11, 64 }
 0x585   :  { %p1480_p9 = scmp.ne.s32.totalorder %s1745_s11, %s1479_s26  ;;  %p1483_p10 = scmp.lt.u32.totalorder %s1479_s26, %s1745_s11 }
 0x587   :  { %p1485_p11 = pnand %p1483_p10, %p1480_p9 }
 0x589   :  { %1488 = shalt.err (!%p1485_p11)
}
 0x58a   :  { %1078 = dma.vmem_to_hbm [thread:$0]  %s1076_s23, 64, %s1745_s11, [#allocation4]  }
 0x58b   :  { %1495 = dma.done.wait [#allocation4], 64  }
 0x58c   :  { %1496 = vsyncadd [#allocation4], 4294967232 }
 0x58d   :  { %1082 = vsyncpa [#allocation3], 1 }
 0x58e   :  { %1083 = vsyncpa [#allocation6], 1 }
 0x58f   :  { %1084 = vsyncpa [#allocation9], 1 }
 0x590   :  { %1085 = vsyncpa [#allocation4], 1 }

</bundles_post_ra>
